<compile_context>
chip_gen: v7x
topology: tpu7x:2x2x1
jax: 0.10.0
libtpu: 0.0.40
codegen_flags: <defaults>
</compile_context>

<pallas_src>
import functools

import jax
import jax.numpy as jnp
from jax.experimental import pallas as pl
from jax.experimental.pallas import tpu as pltpu


def _round_up(x, m):
    return ((x + m - 1) // m) * m


def _cdiv(a, b):
    return (a + b - 1) // b


def _vmem_capacity_bytes():
    """Physical VMEM per core (trace-time query), with a conservative fallback."""
    try:
        info = pltpu.get_tpu_info()
        cap = getattr(info, "vmem_capacity_bytes", None)
        if cap:
            return int(cap)
    except Exception:
        pass
    return 64 * 1024 * 1024  # assume the smallest (v7x) part if the query fails


def _linear_full_k_kernel(x_ref, w_ref, b_ref, o_ref):
    """One (tm, tn) output tile; full-K contraction in a single MXU call.

    x_ref: (tm, K_pad)   activations
    w_ref: (K_pad, tn)   weight, already transposed to (in, out) in the wrapper
    b_ref: (1, tn)       bias (f32)
    """
    acc = jnp.dot(x_ref[...], w_ref[...], preferred_element_type=jnp.float32)
    o_ref[...] = (acc + b_ref[...].astype(jnp.float32)).astype(o_ref.dtype)


def _linear_ktiled_kernel(x_ref, w_ref, b_ref, o_ref, acc_ref):
    """K-tiled variant: f32 VMEM accumulator, init at k==0, epilogue at k==last."""
    k = pl.program_id(2)

    @pl.when(k == 0)
    def _():
        acc_ref[...] = jnp.zeros_like(acc_ref)

    acc_ref[...] += jnp.dot(x_ref[...], w_ref[...], preferred_element_type=jnp.float32)

    @pl.when(k == pl.num_programs(2) - 1)
    def _():
        o_ref[...] = (acc_ref[...] + b_ref[...].astype(jnp.float32)).astype(o_ref.dtype)


def _plan(M, N_pad, K_pad, cbytes, obytes, budget_bytes):
    """Choose (kind, tm, tn, tk, footprint_bytes) under the VMEM budget.

    cbytes: itemsize of the compute dtype (x/W blocks).
    obytes: itemsize of the output dtype (output block).
    Footprint includes double-buffered x/W/bias/out blocks plus the f32
    (tm, tn) matmul temporary / accumulator.
    """
    m_cap = _round_up(max(M, 8), 8)
    n_cap = N_pad

    def fp(tm, tn, tk):
        return (2 * tm * tk * cbytes      # x blocks (double-buffered)
                + 2 * tk * tn * cbytes    # W blocks (double-buffered)
                + 2 * tn * 4              # bias blocks
                + 2 * tm * tn * obytes    # output blocks
                + tm * tn * 4)            # f32 dot temporary / accumulator

    tm_cands = sorted({min(t, m_cap) for t in (1024, 512, 256, 128, 64, 32, 16, 8)},
                      reverse=True)
    tn_cands = sorted({min(t, n_cap) for t in (n_cap, 1024, 512, 256, 128)},
                      reverse=True)
    tm_min = min(256, m_cap)
    tn_min = min(256, n_cap)

    # 1) Full-K-resident plan (no accumulator, one MXU contraction per tile).
    #    Prefer the widest weight column panel (tn == N_pad => x read once).
    for tn in tn_cands:
        if tn < tn_min:
            break
        for tm in tm_cands:
            if tm < tm_min:
                break
            if fp(tm, tn, K_pad) <= budget_bytes:
                return "full_k", tm, tn, K_pad, fp(tm, tn, K_pad)

    # 2) K-tiled plan: keep >=256 output tiles (MXU is 256x256 on v6e/v7x)
    #    and loop over K with an f32 accumulator instead of shrinking tm/tn.
    for tsz in (512, 256, 128):
        tm = min(tsz, m_cap)
        tn = min(tsz, n_cap)
        for tk in (4096, 2048, 1024, 512, 256, 128):
            if tk > K_pad or K_pad % tk:
                continue
            if fp(tm, tn, tk) <= budget_bytes:
                return "k_tiled", tm, tn, tk, fp(tm, tn, tk)

    # 3) Last resort: minimal legal tiles.
    return "k_tiled", 8, 128, 128, fp(8, 128, 128)


@functools.partial(jax.jit, static_argnames=("compute_dtype",))
def pre_mlp_forward(x, weight, bias, *, compute_dtype="auto"):
    """y = x @ weight.T + bias  (torch.nn.Linear semantics).

    x:      (..., D_in)
    weight: (D_out, D_in)  -- PyTorch layout (transposed once in the wrapper)
    bias:   (D_out,)
    compute_dtype: "auto" (default) casts f32 x/W to bf16 for the MXU while
        keeping f32 accumulation, f32 bias epilogue and an f32 output;
        None keeps strict f32 nn.Linear numerics; or pass an explicit dtype.
    """
    orig_dtype = x.dtype
    *lead, D_in = x.shape
    D_out = weight.shape[0]

    if compute_dtype == "auto":
        compute_dtype = jnp.bfloat16 if orig_dtype == jnp.float32 else None

    x2d = x.reshape(-1, D_in)
    if compute_dtype is not None:
        x2d = x2d.astype(compute_dtype)
        weight = weight.astype(compute_dtype)

    M, K, N = x2d.shape[0], D_in, D_out
    K_pad = _round_up(K, 128)
    N_pad = _round_up(N, 128)

    # Pre-transpose the weight ONCE to (K, N) so the kernel is a plain NN matmul
    # (no per-step transposed-RHS relayout of the resident weight panel).
    w_t = weight.T
    if (K_pad, N_pad) != (K, N):
        w_t = jnp.pad(w_t, ((0, K_pad - K), (0, N_pad - N)))
    b2d = bias.astype(jnp.float32).reshape(1, N)
    if N_pad != N:
        b2d = jnp.pad(b2d, ((0, 0), (0, N_pad - N)))

    # Only the K padding must be zeros (it feeds the contraction).  The ragged
    # M edge is handled by the cdiv grid: garbage rows in the last input block
    # produce garbage output rows that are masked on write -- no full-copy pad.
    if K_pad != K:
        x2d = jnp.pad(x2d, ((0, 0), (0, K_pad - K)))

    cbytes = jnp.dtype(x2d.dtype).itemsize
    obytes = jnp.dtype(orig_dtype).itemsize

    vmem_cap = _vmem_capacity_bytes()
    budget = min(int(0.45 * vmem_cap), 56 * 1024 * 1024)   # ~56 MiB on 128 MiB parts, ~28 MiB on v7x
    kind, tm, tn, tk, fp_bytes = _plan(M, N_pad, K_pad, cbytes, obytes, budget)

    n_blocks = _cdiv(N_pad, tn)
    m_blocks = _cdiv(M, tm)

    # Clamp the scoped-VMEM limit well below physical capacity, per generation.
    ceiling = max(min(int(0.80 * vmem_cap), vmem_cap - 8 * 1024 * 1024), 36 * 1024 * 1024)
    vmem_limit = int(min(ceiling, max(32 * 1024 * 1024,
                                      fp_bytes + fp_bytes // 4 + (2 << 20))))

    cost = pl.CostEstimate(
        flops=2 * M * N_pad * K_pad,
        transcendentals=0,
        bytes_accessed=int(x2d.size * cbytes + w_t.size * cbytes
                           + b2d.size * 4 + M * N_pad * obytes),
    )

    out_shape = jax.ShapeDtypeStruct((M, N_pad), orig_dtype)

    if kind == "full_k":
        # Grid: (N panels OUTER, M blocks inner).  Weight block index depends
        # only on the outer axis -> the (K_pad, tn) panel stays VMEM-resident
        # across the whole inner M sweep (W read from HBM once per panel), and
        # a v7x megacore split shards disjoint weight panels across cores.
        grid = (n_blocks, m_blocks)
        in_specs = [
            pl.BlockSpec((tm, K_pad), lambda j, i: (i, 0)),   # x row block (full K)
            pl.BlockSpec((K_pad, tn), lambda j, i: (0, j)),   # weight panel (in, out)
            pl.BlockSpec((1, tn), lambda j, i: (0, j)),       # bias block
        ]
        out_spec = pl.BlockSpec((tm, tn), lambda j, i: (i, j))
        scratch = []
        kernel = _linear_full_k_kernel
        dims = ("parallel", "parallel")
    else:
        # K-tiled path (large K on small-VMEM parts): reduction axis innermost,
        # marked "arbitrary", with an f32 accumulator scratch.
        grid = (n_blocks, m_blocks, K_pad // tk)
        in_specs = [
            pl.BlockSpec((tm, tk), lambda j, i, k: (i, k)),
            pl.BlockSpec((tk, tn), lambda j, i, k: (k, j)),
            pl.BlockSpec((1, tn), lambda j, i, k: (0, j)),
        ]
        out_spec = pl.BlockSpec((tm, tn), lambda j, i, k: (i, j))
        scratch = [pltpu.VMEM((tm, tn), jnp.float32)]
        kernel = _linear_ktiled_kernel
        dims = ("parallel", "parallel", "arbitrary")

    out2d = pl.pallas_call(
        kernel,
        out_shape=out_shape,
        grid_spec=pltpu.PrefetchScalarGridSpec(
            num_scalar_prefetch=0,
            grid=grid,
            in_specs=in_specs,
            out_specs=out_spec,
            scratch_shapes=scratch,
        ),
        compiler_params=pltpu.CompilerParams(
            dimension_semantics=dims,
            vmem_limit_bytes=vmem_limit,
        ),
        cost_estimate=cost,
    )(x2d, w_t, b2d)

    out = out2d[:, :N] if N_pad != N else out2d
    return out.reshape(*lead, N)


if __name__ == "__main__":
    # Small, consistent shapes: batch=2, seq=8, linear_dim=256.
    B, S, D = 2, 8, 256

    key = jax.random.PRNGKey(0)
    kx, kw, kb = jax.random.split(key, 3)

    # Deterministic parameter init (mimics nn.Linear's uniform(-1/sqrt(D), 1/sqrt(D))).
    bound = 1.0 / jnp.sqrt(jnp.float32(D))
    weight = jax.random.uniform(kw, (D, D), jnp.float32, -bound, bound)
    bias = jax.random.uniform(kb, (D,), jnp.float32, -bound, bound)
    x = jax.random.normal(kx, (B, S, D), jnp.float32)

    y_ref = x @ weight.T + bias

    # Default fast path: bf16 inputs, f32 accumulation/epilogue, f32 output.
    y = pre_mlp_forward(x, weight, bias)
    jax.block_until_ready(y)
    assert y.shape == (B, S, D)
    assert jnp.allclose(y, y_ref, atol=5e-2, rtol=5e-2)

    # Strict f32 parity path (exact nn.Linear semantics).
    y32 = pre_mlp_forward(x, weight, bias, compute_dtype=None)
    jax.block_until_ready(y32)
    assert jnp.allclose(y32, y_ref, atol=1e-4, rtol=1e-4)

    # Module-default linear_dim=1024 with a non-tile-aligned M: exercises the
    # ragged-M edge block (no activation pad), the weight pre-transpose, and
    # full-column-panel (tn == N) residency.
    B2, S2, D2 = 3, 37, 1024
    k2x, k2w, k2b = jax.random.split(jax.random.PRNGKey(1), 3)
    bound2 = 1.0 / jnp.sqrt(jnp.float32(D2))
    w2 = jax.random.uniform(k2w, (D2, D2), jnp.float32, -bound2, bound2)
    b2 = jax.random.uniform(k2b, (D2,), jnp.float32, -bound2, bound2)
    x2 = jax.random.normal(k2x, (B2, S2, D2), jnp.float32)

    y2_ref = x2 @ w2.T + b2

    y2 = pre_mlp_forward(x2, w2, b2)                      # bf16 default
    jax.block_until_ready(y2)
    assert y2.shape == (B2, S2, D2)
    assert jnp.allclose(y2, y2_ref, atol=5e-2, rtol=5e-2)

    y2_32 = pre_mlp_forward(x2, w2, b2, compute_dtype=None)   # strict f32
    jax.block_until_ready(y2_32)
    assert jnp.allclose(y2_32, y2_ref, atol=1e-3, rtol=1e-3)

    print("KERNEL_OK")
</pallas_src>

<mosaic_0001>
module attributes {stable_mosaic.version = 11 : i64} {
  func.func @_linear_full_k_kernel(%arg0: i32, %arg1: i32, %arg2: memref<16x256xbf16, #tpu.memory_space<vmem>>, %arg3: memref<256x256xbf16, #tpu.memory_space<vmem>>, %arg4: memref<1x256xf32, #tpu.memory_space<vmem>>, %arg5: memref<16x256xf32, #tpu.memory_space<vmem>>) attributes {dimension_semantics = [#tpu.dimension_semantics<parallel>, #tpu.dimension_semantics<parallel>], iteration_bounds = array<i64: 1, 1>, scalar_prefetch = 0 : i64, scratch_operands = 0 : i64, tpu.core_type = #tpu.core_type<tc>, window_params = [{transform_indices = @transform_0, window_bounds = array<i64: 16, 256>}, {transform_indices = @transform_1, window_bounds = array<i64: 256, 256>}, {transform_indices = @transform_2, window_bounds = array<i64: 1, 256>}, {transform_indices = @transform_3, window_bounds = array<i64: 16, 256>}]} {
    %c0 = arith.constant 0 : index
    %c0_0 = arith.constant 0 : index
    %0 = vector.load %arg2[%c0, %c0_0] : memref<16x256xbf16, #tpu.memory_space<vmem>>, vector<16x256xbf16>
    %c0_1 = arith.constant 0 : index
    %c0_2 = arith.constant 0 : index
    %1 = vector.load %arg3[%c0_1, %c0_2] : memref<256x256xbf16, #tpu.memory_space<vmem>>, vector<256x256xbf16>
    %cst = arith.constant dense<0.000000e+00> : vector<16x256xf32>
    %2 = tpu.matmul %0, %1, %cst {dimension_numbers = #tpu.dot_dimension_numbers<[1], [0], [0], [1], [0, 0, 1, 1], [], []>} : vector<16x256xbf16>, vector<256x256xbf16>, vector<16x256xf32> -> vector<16x256xf32>
    %c0_3 = arith.constant 0 : index
    %c0_4 = arith.constant 0 : index
    %3 = vector.load %arg4[%c0_3, %c0_4] : memref<1x256xf32, #tpu.memory_space<vmem>>, vector<1x256xf32>
    %4 = vector.broadcast %3 : vector<1x256xf32> to vector<16x256xf32>
    %5 = arith.addf %2, %4 : vector<16x256xf32>
    %c0_5 = arith.constant 0 : index
    %c0_6 = arith.constant 0 : index
    %6 = vector.load %arg5[%c0_5, %c0_6] : memref<16x256xf32, #tpu.memory_space<vmem>>, vector<16x256xf32>
    tpu.vector_store %arg5[%c0_5, %c0_6], %5 {strides = array<i32>} : memref<16x256xf32, #tpu.memory_space<vmem>>, vector<16x256xf32>,
    return
  }
  func.func @transform_0(%arg0: i32, %arg1: i32) -> (i32, i32) {
    %c0_i32 = arith.constant 0 : i32
    %c0_i32_0 = arith.constant 0 : i32
    return %arg1, %c0_i32 : i32, i32
  }
  func.func @transform_1(%arg0: i32, %arg1: i32) -> (i32, i32) {
    %c0_i32 = arith.constant 0 : i32
    %c0_i32_0 = arith.constant 0 : i32
    return %c0_i32, %arg0 : i32, i32
  }
  func.func @transform_2(%arg0: i32, %arg1: i32) -> (i32, i32) {
    %c0_i32 = arith.constant 0 : i32
    %c0_i32_0 = arith.constant 0 : i32
    return %c0_i32, %arg0 : i32, i32
  }
  func.func @transform_3(%arg0: i32, %arg1: i32) -> (i32, i32) {
    %c0_i32 = arith.constant 0 : i32
    return %arg1, %arg0 : i32, i32
  }
}

</mosaic_0001>

<bundles_post_ra>
// kernel: pre_mlp_forward.1
= control target key start
LH: loop header
LB: loop body
LE: loop exit
PB: predicated region body
PF: predicated region fallthrough
CT: control target
= control target key end

     0   :  { %s546_s0 = inlined_call_operand.vmem [shape: bf16[16,256], index: 0, kind: input, shape index: {}]   ;;  %s547_s1 = inlined_call_operand.vmem [shape: bf16[256,256], index: 1, kind: input, shape index: {}]   ;;  %s548_s2 = inlined_call_operand.vmem [shape: f32[1,256], index: 2, kind: input, shape index: {}]   ;;  %s549_s3 = inlined_call_operand.hbm [shape: f32[16,256], index: 3, kind: output, shape index: {}]  }
   0x1   :  { %v331_v0 = vld [vmem:[%s547_s1 + $0x4] ss:$8 sps:$4 sm:$0xff]   ;;  %v333_v1 = vld [vmem:[%s547_s1] ss:$8 sps:$4 sm:$0xff]   ;;  %v334_v2 = vld [vmem:[%s547_s1 + $0x14] ss:$8 sps:$4 sm:$0xff]  }
   0x2   :  { %231 = vmatprep.subr.bf16.mxu0 %v331_v0  ;;  %v336_v3 = vld [vmem:[%s547_s1 + $0x10] ss:$8 sps:$4 sm:$0xff]   ;;  %v337_v4 = vld [vmem:[%s547_s1 + $0x24] ss:$8 sps:$4 sm:$0xff]   ;;  %v339_v5 = vld [vmem:[%s547_s1 + $0x20] ss:$8 sps:$4 sm:$0xff]  }
   0x3   :  { %232 = vmatpush1.bf16.msra.mxu0 %v333_v1  ;;  %v340_v6 = vld [vmem:[%s547_s1 + $0x34] ss:$8 sps:$4 sm:$0xff]   ;;  %v342_v7 = vld [vmem:[%s547_s1 + $0x30] ss:$8 sps:$4 sm:$0xff]   ;;  %v343_v8 = vld [vmem:[%s547_s1 + $0x44] ss:$8 sps:$4 sm:$0xff]  }
   0x4   :  { %233 = vmatprep.subr.bf16.mxu0 %v334_v2  ;;  %v345_v9 = vld [vmem:[%s547_s1 + $0x40] ss:$8 sps:$4 sm:$0xff]   ;;  %v346_v10 = vld [vmem:[%s547_s1 + $0x54] ss:$8 sps:$4 sm:$0xff]   ;;  %v348_v11 = vld [vmem:[%s547_s1 + $0x50] ss:$8 sps:$4 sm:$0xff]  }
   0x5   :  { %v349_v12 = vld [vmem:[%s547_s1 + $0x64] ss:$8 sps:$4 sm:$0xff]   ;;  %v351_v14 = vld [vmem:[%s547_s1 + $0x60] ss:$8 sps:$4 sm:$0xff]  }
   0x6   :  { %v381_v13 = vld [vmem:[%s546_s0 + $0x4] ss:$8 sps:$4 sm:$0xff]  }
   0x7   :  { %234 = vmatpush1.bf16.msra.mxu0 %v336_v3 }
   0x8   :  { %235 = vmatprep.subr.bf16.mxu0 %v337_v4 }
   0xb   :  { %236 = vmatpush1.bf16.msra.mxu0 %v339_v5 }
   0xc   :  { %237 = vmatprep.subr.bf16.mxu0 %v340_v6 }
   0xf   :  { %238 = vmatpush1.bf16.msra.mxu0 %v342_v7 }
  0x10   :  { %239 = vmatprep.subr.bf16.mxu0 %v343_v8 }
  0x13   :  { %240 = vmatpush1.bf16.msra.mxu0 %v345_v9 }
  0x14   :  { %241 = vmatprep.subr.bf16.mxu0 %v346_v10 }
  0x17   :  { %242 = vmatpush1.bf16.msra.mxu0 %v348_v11 }
  0x18   :  { %8 = vsyncpa [#allocation3], 0  ;;  %243 = vmatprep.subr.bf16.mxu0 %v349_v12  ;;  %v352_v15 = vld [vmem:[%s547_s1 + $0x74] ss:$8 sps:$4 sm:$0xff]   ;;  %263 = vmatprep.mubr.bf16.mxu0 %v381_v13  ;;  %v354_v16 = vld [vmem:[%s547_s1 + $0x70] ss:$8 sps:$4 sm:$0xff]   ;;  %v51_v34 = vlaneseq }
  0x19   :  { %v355_v17 = vld [vmem:[%s547_s1 + $0x84] ss:$8 sps:$4 sm:$0xff]   ;;  %v357_v18 = vld [vmem:[%s547_s1 + $0x80] ss:$8 sps:$4 sm:$0xff]   ;;  %v358_v19 = vld [vmem:[%s547_s1 + $0x94] ss:$8 sps:$4 sm:$0xff]  }
  0x1a   :  { %v360_v20 = vld [vmem:[%s547_s1 + $0x90] ss:$8 sps:$4 sm:$0xff]   ;;  %v361_v21 = vld [vmem:[%s547_s1 + $0xa4] ss:$8 sps:$4 sm:$0xff]   ;;  %v363_v22 = vld [vmem:[%s547_s1 + $0xa0] ss:$8 sps:$4 sm:$0xff]  }
  0x1b   :  { %244 = vmatpush1.bf16.msra.mxu0 %v351_v14  ;;  %v364_v23 = vld [vmem:[%s547_s1 + $0xb4] ss:$8 sps:$4 sm:$0xff]   ;;  %v366_v24 = vld [vmem:[%s547_s1 + $0xb0] ss:$8 sps:$4 sm:$0xff]   ;;  %v367_v25 = vld [vmem:[%s547_s1 + $0xc4] ss:$8 sps:$4 sm:$0xff]  }
  0x1c   :  { %245 = vmatprep.subr.bf16.mxu0 %v352_v15  ;;  %v369_v26 = vld [vmem:[%s547_s1 + $0xc0] ss:$8 sps:$4 sm:$0xff]   ;;  %v370_v27 = vld [vmem:[%s547_s1 + $0xd4] ss:$8 sps:$4 sm:$0xff]   ;;  %v372_v28 = vld [vmem:[%s547_s1 + $0xd0] ss:$8 sps:$4 sm:$0xff]  }
  0x1d   :  { %v373_v29 = vld [vmem:[%s547_s1 + $0xe4] ss:$8 sps:$4 sm:$0xff]   ;;  %v375_v30 = vld [vmem:[%s547_s1 + $0xe0] ss:$8 sps:$4 sm:$0xff]   ;;  %v376_v31 = vld [vmem:[%s547_s1 + $0xf4] ss:$8 sps:$4 sm:$0xff]  }
  0x1e   :  { %v378_v32 = vld [vmem:[%s547_s1 + $0xf0] ss:$8 sps:$4 sm:$0xff]   ;;  %v379_v33 = vld [vmem:[%s546_s0] ss:$8 sps:$4 sm:$0xff]   ;;  %v52_v35 = vshrl.u32 %v51_v34, 7  ;;  %s406_s28 = smov [#allocation2]  }
  0x1f   :  { %246 = vmatpush1.bf16.msra.mxu0 %v354_v16  ;;  %v49_v37 = vld [vmem:[%s548_s2] sm:$0x3]  ;;  %s283_s1 = sshll.u32 %s406_s28, 4  ;;  %s284_s1 = int_to_ptr.vmem [resolvable:$true] %s283_s1 }
  0x20   :  { %247 = vmatprep.subr.bf16.mxu0 %v355_v17  ;;  %v53_v36 = vsub.s32 0, %v52_v35  ;;  %v57_v38 = vsub.s32 1, %v52_v35  ;;  %s382_s0 = scalar_lea.vmem %s284_s1, 512  ;;  %p387_p1 = scmp.lt.s32.totalorder %s284_s1, %s284_s1 }
  0x21   :  { %p383_p0 = scmp.ne.s32.totalorder %s284_s1, %s382_s0  ;;  %p388_p2 = scmp.lt.s32.totalorder %s382_s0, %s382_s0 }
  0x22   :  { %v54_v39 = vrot.slane %v49_v37, %v53_v36  ;;  %v58_v40 = vrot.slane %v49_v37, %v57_v38 }
  0x23   :  { %248 = vmatpush1.bf16.msra.mxu0 %v357_v18  ;;  %p389_p3 = por %p388_p2, %p387_p1 }
  0x24   :  { %249 = vmatprep.subr.bf16.mxu0 %v358_v19 }
  0x25   :  { %p390_p4 = pnand %p389_p3, %p383_p0 }
  0x27   :  { %250 = vmatpush1.bf16.msra.mxu0 %v360_v20 }
  0x28   :  { %251 = vmatprep.subr.bf16.mxu0 %v361_v21 }
  0x2b   :  { %252 = vmatpush1.bf16.msra.mxu0 %v363_v22 }
  0x2c   :  { %253 = vmatprep.subr.bf16.mxu0 %v364_v23 }
  0x2f   :  { %254 = vmatpush1.bf16.msra.mxu0 %v366_v24 }
  0x30   :  { %255 = vmatprep.subr.bf16.mxu0 %v367_v25 }
  0x33   :  { %256 = vmatpush1.bf16.msra.mxu0 %v369_v26 }
  0x34   :  { %257 = vmatprep.subr.bf16.mxu0 %v370_v27 }
  0x37   :  { %258 = vmatpush1.bf16.msra.mxu0 %v372_v28 }
  0x38   :  { %259 = vmatprep.subr.bf16.mxu0 %v373_v29 }
  0x3b   :  { %260 = vmatpush1.bf16.msra.mxu0 %v375_v30 }
  0x3c   :  { %261 = vmatprep.subr.bf16.mxu0 %v376_v31 }
  0x3f   :  { %262 = vmatpush1.bf16.msra.mxu0 %v378_v32 }
  0x42   :  { %264 = vmatmul.mubr.bf16.vlgmr.msra.gmra.mrb[0].mxu0 %v379_v33 }
 0x115   :  { %v265_v41 = vpop.f32.mrb[0].mxu0 }
 0x116   :  { %v266_v42 = vadd.f32 %v265_v41, %v54_v39  ;;  %v267_v43 = vpop.f32.mrb[1].mxu0 }
 0x117   :  { %v268_v44 = vadd.f32 %v267_v43, %v58_v40  ;;  %v269_v45 = vpop.f32.mrb[2].mxu0 }
 0x118   :  { %274 = vst [vmem:[#allocation2] sm:$0xff] %v266_v42  ;;  %v270_v46 = vadd.f32 %v269_v45, %v54_v39  ;;  %v271_v47 = vpop.f32.mrb[3].mxu0 }
 0x119   :  { %275 = vst [vmem:[#allocation2 + $0x8] sm:$0xff] %v268_v44  ;;  %v272_v48 = vadd.f32 %v271_v47, %v58_v40 }
 0x11a   :  { %276 = vst [vmem:[#allocation2 + $0x10] sm:$0xff] %v270_v46 }
 0x11b   :  { %277 = vst [vmem:[#allocation2 + $0x18] sm:$0xff] %v272_v48 }
 0x11c   :  { %393 = shalt.err (!%p390_p4)
}
 0x11d   :  { %s394_s30 = scalar_lea.hbm %s549_s3, 512 }
 0x11e   :  { %p395_p5 = scmp.ne.s32.totalorder %s549_s3, %s394_s30  ;;  %p398_p6 = scmp.lt.u32.totalorder %s394_s30, %s549_s3 }
 0x120   :  { %p400_p7 = pnand %p398_p6, %p395_p5 }
 0x122   :  { %403 = shalt.err (!%p400_p7)
}
 0x123   :  { %s407_s8 = smov 256   ;;  %s408_s9 = smov 16  }
 0x124   :  { %289 = dma.vmem_to_hbm [thread:$0]  %s284_s1, 512, %s549_s3, [#allocation3], %s407_s8, %s407_s8, %s408_s9  }
 0x125   :  { %404 = dma.done.wait [#allocation3], 512  }
 0x126   :  { %405 = vsyncadd [#allocation3], 4294966784 }
 0x127   :  { %293 = vsyncpa [#allocation3], 1 }

</bundles_post_ra>
